<compile_context>
chip_gen: v7x
topology: tpu7x:2x2x1
jax: 0.10.0
libtpu: 0.0.40
codegen_flags: <defaults>
</compile_context>

<pallas_src>
import jax
import jax.numpy as jnp
from jax import lax
from jax.experimental import pallas as pl
from jax.experimental.pallas import tpu as pltpu


def _round_up(v, m):
    return ((v + m - 1) // m) * m


def mlp_kernel(x_ref, w1_ref, b1_ref, w2_ref, b2_ref, o_ref):
    # hidden = relu(x @ W1 + b1)  -- (batch_tile, hid_pad), f32 accumulation.
    h = jnp.dot(x_ref[...], w1_ref[...], preferred_element_type=jnp.float32)
    h = jnp.maximum(h + b1_ref[...], 0.0)                # ReLU on the VPU
    # y = W2 @ h^T -> (8, batch_tile): lane-dense transposed output slab.
    # Only row 0 of W2/b2 is real; rows 1..7 are zero padding (sublane=8).
    y = lax.dot_general(
        w2_ref[...], h.astype(w2_ref.dtype),
        dimension_numbers=(((1,), (1,)), ((), ())),
        preferred_element_type=jnp.float32) + b2_ref[...]
    # Sigmoid over (8, batch_tile) only (exp on EUP, add/div on VPU).
    o_ref[...] = (1.0 / (1.0 + jnp.exp(-y))).astype(o_ref.dtype)


def prepare_params(w1, b1, w2, b2, *, compute_dtype=jnp.float32):
    """Pad / transpose the (tiny) parameters ONCE, outside the per-call path.

    w1: (hidden, input_dim)  torch nn.Linear layout
    b1: (hidden,)
    w2: (1, hidden)
    b2: (1,)
    Returns (w1_p, b1_p, w2_p, b2_p) ready for mlp_forward.
    """
    hidden, input_dim = w1.shape
    assert w2.shape == (1, hidden) and b1.shape == (hidden,) and b2.shape == (1,)
    hid_pad = _round_up(hidden, 128)

    # (input_dim, hid_pad): x @ W1 directly; input_dim stays unpadded.
    w1_p = jnp.zeros((input_dim, hid_pad), compute_dtype).at[:, :hidden].set(
        w1.T.astype(compute_dtype))
    b1_p = jnp.zeros((1, hid_pad), jnp.float32).at[0, :hidden].set(b1)
    # (8, hid_pad): row 0 holds the real output weights, rows 1..7 are zero.
    w2_p = jnp.zeros((8, hid_pad), compute_dtype).at[0, :hidden].set(
        w2[0].astype(compute_dtype))
    b2_p = jnp.zeros((8, 1), jnp.float32).at[0, 0].set(b2[0])
    return w1_p, b1_p, w2_p, b2_p


def mlp_forward(x, w1_p, b1_p, w2_p, b2_p, *, batch_tile=512,
                single_buffer_weights=False,
                vmem_limit_bytes=32 * 1024 * 1024):
    """sigmoid(relu(x @ W1.T + b1) @ W2.T + b2).reshape(-1)  (PyTorch MLP).

    x: (N, input_dim); params are the pre-padded outputs of prepare_params.
    Returns (N,) float32.
    """
    n, input_dim = x.shape
    in_dim_w, hid_pad = w1_p.shape
    assert in_dim_w == input_dim, "w1_p layout must be (input_dim, hid_pad)"
    assert hid_pad % 128 == 0
    assert b1_p.shape == (1, hid_pad)
    assert w2_p.shape == (8, hid_pad)
    assert b2_p.shape == (8, 1)
    # Multiple of 128 keeps the (8, batch_tile) output blocks lane-dense
    # (unmasked vst) and satisfies the (8,128) block rule.
    assert batch_tile % 128 == 0, "batch_tile must be a multiple of 128"

    n_pad = _round_up(n, batch_tile)
    x_in = x if x.dtype == w1_p.dtype else x.astype(w1_p.dtype)
    if n_pad != n:
        # Only pad the batch when the tile does not divide it; no lane padding
        # of x is ever materialized.
        x_in = jnp.zeros((n_pad, input_dim), x_in.dtype).at[:n].set(x_in)

    grid = (n_pad // batch_tile,)

    def _resident_spec(shape):
        # Constant block index -> stays VMEM-resident across grid steps.
        if single_buffer_weights:
            # v7x / production hidden sizes: halve resident-weight VMEM.
            return pl.BlockSpec(shape, lambda i: (0,) * len(shape),
                                pipeline_mode=pl.Buffered(1))
        return pl.BlockSpec(shape, lambda i: (0,) * len(shape))

    out = pl.pallas_call(
        mlp_kernel,
        out_shape=jax.ShapeDtypeStruct((8, n_pad), jnp.float32),
        grid=grid,
        in_specs=[
            # x tiled over the batch axis (pipelined, megacore-parallel);
            # last block dim == full array dim, so no 128-padding needed.
            pl.BlockSpec((batch_tile, input_dim), lambda i: (i, 0)),
            _resident_spec((input_dim, hid_pad)),
            _resident_spec((1, hid_pad)),
            _resident_spec((8, hid_pad)),
            _resident_spec((8, 1)),
        ],
        # Transposed, lane-dense output: each grid step writes its own
        # (8, batch_tile) column block of the (8, n_pad) slab.
        out_specs=pl.BlockSpec((8, batch_tile), lambda i: (0, i)),
        compiler_params=pltpu.CompilerParams(
            dimension_semantics=("parallel",),
            vmem_limit_bytes=vmem_limit_bytes),
    )(x_in, w1_p, b1_p, w2_p, b2_p)

    # Row 0 holds the real logits; contiguous row slice (cheap XLA slice).
    # .view(-1) in the torch module maps to this 1-D result.
    return out[0, :n]


def orthogonal_init(key, rows, cols):
    """Orthogonal init matching torch.nn.init.orthogonal_ semantics."""
    big, small = (rows, cols) if rows >= cols else (cols, rows)
    a = jax.random.normal(key, (big, small), dtype=jnp.float32)
    q, r = jnp.linalg.qr(a)
    q = q * jnp.sign(jnp.diag(r))            # make the decomposition unique
    if rows < cols:
        q = q.T
    return q                                  # (rows, cols)


def init_params(key, input_dim, hidden_units):
    """Matches init_layer(): orthogonal weight (w_scale=1), zero bias."""
    k1, k2 = jax.random.split(key)
    w1 = orthogonal_init(k1, hidden_units, input_dim)     # (hid, in)
    b1 = jnp.zeros((hidden_units,), jnp.float32)
    w2 = orthogonal_init(k2, 1, hidden_units)             # (1, hid)
    b2 = jnp.zeros((1,), jnp.float32)
    return w1, b1, w2, b2


def reference_forward(x, w1, b1, w2, b2):
    h = jnp.maximum(x @ w1.T + b1, 0.0)
    y = h @ w2.T + b2
    return (1.0 / (1.0 + jnp.exp(-y))).reshape(-1)


if __name__ == "__main__":
    # Shapes consistent with the module: (batch, input_dim) input and the
    # nn.Module default hidden_units=128.  batch=512 with batch_tile=128
    # gives grid=(4,): an even, >=4-step "parallel" batch axis so both v7x
    # TensorCores get pipelined work.
    batch, input_dim, hidden_units = 512, 64, 128

    key = jax.random.PRNGKey(0)
    k_x, k_w = jax.random.split(key)
    x = jax.random.normal(k_x, (batch, input_dim), dtype=jnp.float32)
    w1, b1, w2, b2 = init_params(k_w, input_dim, hidden_units)

    # Pad/transpose the parameters once (cache these for repeated calls).
    params = prepare_params(w1, b1, w2, b2)

    out = mlp_forward(x, *params, batch_tile=128)
    jax.block_until_ready(out)

    ref = reference_forward(x, w1, b1, w2, b2)
    assert out.shape == (batch,)
    assert jnp.allclose(out, ref, atol=2e-5, rtol=2e-5), (
        float(jnp.max(jnp.abs(out - ref))))

    print("KERNEL_OK")
</pallas_src>

<mosaic_0001>
module attributes {stable_mosaic.version = 11 : i64} {
  func.func @mlp_kernel(%arg0: i32, %arg1: memref<128x64xf32, #tpu.memory_space<vmem>>, %arg2: memref<64x128xf32, #tpu.memory_space<vmem>>, %arg3: memref<1x128xf32, #tpu.memory_space<vmem>>, %arg4: memref<8x128xf32, #tpu.memory_space<vmem>>, %arg5: memref<8x1xf32, #tpu.memory_space<vmem>>, %arg6: memref<8x128xf32, #tpu.memory_space<vmem>>) attributes {dimension_semantics = [#tpu.dimension_semantics<parallel>], iteration_bounds = array<i64: 4>, scalar_prefetch = 0 : i64, scratch_operands = 0 : i64, tpu.core_type = #tpu.core_type<tc>, window_params = [{transform_indices = @transform_0, window_bounds = array<i64: 128, 64>}, {pipeline_mode = #tpu.pipeline_mode<synchronous>, transform_indices = @transform_1, window_bounds = array<i64: 64, 128>}, {pipeline_mode = #tpu.pipeline_mode<synchronous>, transform_indices = @transform_2, window_bounds = array<i64: 1, 128>}, {pipeline_mode = #tpu.pipeline_mode<synchronous>, transform_indices = @transform_3, window_bounds = array<i64: 8, 128>}, {pipeline_mode = #tpu.pipeline_mode<synchronous>, transform_indices = @transform_4, window_bounds = array<i64: 8, 1>}, {transform_indices = @transform_5, window_bounds = array<i64: 8, 128>}]} {
    %c0 = arith.constant 0 : index
    %c0_0 = arith.constant 0 : index
    %0 = vector.load %arg1[%c0, %c0_0] : memref<128x64xf32, #tpu.memory_space<vmem>>, vector<128x64xf32>
    %c0_1 = arith.constant 0 : index
    %c0_2 = arith.constant 0 : index
    %1 = vector.load %arg2[%c0_1, %c0_2] : memref<64x128xf32, #tpu.memory_space<vmem>>, vector<64x128xf32>
    %cst = arith.constant dense<0.000000e+00> : vector<128x128xf32>
    %2 = tpu.matmul %0, %1, %cst {dimension_numbers = #tpu.dot_dimension_numbers<[1], [0], [0], [1], [0, 0, 1, 1], [], []>} : vector<128x64xf32>, vector<64x128xf32>, vector<128x128xf32> -> vector<128x128xf32>
    %c0_3 = arith.constant 0 : index
    %c0_4 = arith.constant 0 : index
    %3 = vector.load %arg3[%c0_3, %c0_4] : memref<1x128xf32, #tpu.memory_space<vmem>>, vector<1x128xf32>
    %4 = vector.broadcast %3 : vector<1x128xf32> to vector<128x128xf32>
    %5 = arith.addf %2, %4 : vector<128x128xf32>
    %cst_5 = arith.constant 0.000000e+00 : f32
    %6 = vector.broadcast %cst_5 : f32 to vector<128x128xf32>
    %7 = arith.maximumf %5, %6 : vector<128x128xf32>
    %c0_6 = arith.constant 0 : index
    %c0_7 = arith.constant 0 : index
    %8 = vector.load %arg4[%c0_6, %c0_7] : memref<8x128xf32, #tpu.memory_space<vmem>>, vector<8x128xf32>
    %cst_8 = arith.constant dense<0.000000e+00> : vector<8x128xf32>
    %9 = tpu.matmul %8, %7, %cst_8 {dimension_numbers = #tpu.dot_dimension_numbers<[1], [1], [0], [0], [0, 0, 1, 0], [], []>} : vector<8x128xf32>, vector<128x128xf32>, vector<8x128xf32> -> vector<8x128xf32>
    %c0_9 = arith.constant 0 : index
    %c0_10 = arith.constant 0 : index
    %10 = vector.load %arg5[%c0_9, %c0_10] : memref<8x1xf32, #tpu.memory_space<vmem>>, vector<8x1xf32>
    %11 = vector.broadcast %10 : vector<8x1xf32> to vector<8x128xf32>
    %12 = arith.addf %9, %11 : vector<8x128xf32>
    %cst_11 = arith.constant 0.000000e+00 : f32
    %13 = vector.broadcast %cst_11 : f32 to vector<8x128xf32>
    %14 = arith.subf %13, %12 : vector<8x128xf32>
    %15 = math.exp %14 : vector<8x128xf32>
    %cst_12 = arith.constant 1.000000e+00 : f32
    %16 = vector.broadcast %cst_12 : f32 to vector<8x128xf32>
    %17 = arith.addf %16, %15 : vector<8x128xf32>
    %cst_13 = arith.constant 1.000000e+00 : f32
    %18 = vector.broadcast %cst_13 : f32 to vector<8x128xf32>
    %19 = arith.divf %18, %17 : vector<8x128xf32>
    %c0_14 = arith.constant 0 : index
    %c0_15 = arith.constant 0 : index
    %20 = vector.load %arg6[%c0_14, %c0_15] : memref<8x128xf32, #tpu.memory_space<vmem>>, vector<8x128xf32>
    tpu.vector_store %arg6[%c0_14, %c0_15], %19 {strides = array<i32>} : memref<8x128xf32, #tpu.memory_space<vmem>>, vector<8x128xf32>,
    return
  }
  func.func @transform_0(%arg0: i32) -> (i32, i32) {
    %c0_i32 = arith.constant 0 : i32
    %c0_i32_0 = arith.constant 0 : i32
    return %arg0, %c0_i32 : i32, i32
  }
  func.func @transform_1(%arg0: i32) -> (i32, i32) {
    %c0_i32 = arith.constant 0 : i32
    %c0_i32_0 = arith.constant 0 : i32
    %c0_i32_1 = arith.constant 0 : i32
    return %c0_i32, %c0_i32_0 : i32, i32
  }
  func.func @transform_2(%arg0: i32) -> (i32, i32) {
    %c0_i32 = arith.constant 0 : i32
    %c0_i32_0 = arith.constant 0 : i32
    %c0_i32_1 = arith.constant 0 : i32
    return %c0_i32, %c0_i32_0 : i32, i32
  }
  func.func @transform_3(%arg0: i32) -> (i32, i32) {
    %c0_i32 = arith.constant 0 : i32
    %c0_i32_0 = arith.constant 0 : i32
    %c0_i32_1 = arith.constant 0 : i32
    return %c0_i32, %c0_i32_0 : i32, i32
  }
  func.func @transform_4(%arg0: i32) -> (i32, i32) {
    %c0_i32 = arith.constant 0 : i32
    %c0_i32_0 = arith.constant 0 : i32
    %c0_i32_1 = arith.constant 0 : i32
    return %c0_i32, %c0_i32_0 : i32, i32
  }
  func.func @transform_5(%arg0: i32) -> (i32, i32) {
    %c0_i32 = arith.constant 0 : i32
    %c0_i32_0 = arith.constant 0 : i32
    return %c0_i32, %arg0 : i32, i32
  }
}

</mosaic_0001>

<bundles_post_ra>
// kernel: tpu_custom_call.1
= control target key start
LH: loop header
LB: loop body
LE: loop exit
PB: predicated region body
PF: predicated region fallthrough
CT: control target
= control target key end

     0   :  { %10 = vsyncpa [#allocation3], 0  ;;  %s1128_s0 = inlined_call_operand.vmem [shape: f32[512,64], index: 0, kind: input, shape index: {}]   ;;  %s1129_s1 = inlined_call_operand.vmem [shape: f32[64,128], index: 1, kind: input, shape index: {}]   ;;  %s1130_s2 = inlined_call_operand.vmem [shape: f32[1,128], index: 2, kind: input, shape index: {}]   ;;  %s1131_s3 = inlined_call_operand.vmem [shape: f32[8,128], index: 3, kind: input, shape index: {}]   ;;  %s1132_s4 = inlined_call_operand.vmem [shape: f32[8,1], index: 4, kind: input, shape index: {}]   ;;  %s1133_s5 = inlined_call_operand.hbm [shape: f32[8,512], index: 5, kind: output, shape index: {}]  }
   0x1   :  { %12 = vsyncpa [#allocation3 + $0x1], 0  ;;  %s954_s18 = smov 0   ;;  %s956_s19 = smov 0  }
   0x2   :  { %s958_s20 = smov 0   ;;  %s960_s21 = smov 0  }
   0x3 LB: > { %s975_s22 = sadd.s32 4294967295, %s917_s21   ;;  %s623_s23 = sadd.s32 4294967294, %s917_s21   ;;  %s917_s21 = sphi %s960_s21, %s1139_s21   ;;  %s913_s20 = sphi %s958_s20, %s1138_s20   ;;  %s909_s19 = sphi %s956_s19, %s1137_s19   ;;  %s905_s18 = sphi %s954_s18, %s1136_s18  }
   0x4   : > { %s979_s24 = sadd.s32 1, %s917_s21   ;;  %s135_s25 = sadd.s32 1, %s913_s20 }
   0x5   : > { %s132_s26 = ssub.s32 %s917_s21, %s979_s24  ;;  %p145_p0 = scmp.ne.s32.totalorder %s913_s20, %s909_s19 }
   0x6   : > { %p133_p1 = scmp.eq.s32.totalorder %s132_s26, 0  ;;  %p146_p2 = scmp.eq.s32.totalorder %s975_s22, 3 }
   0x7   : > { %p151_p3 = scmp.ne.s32.totalorder %s909_s19, %s905_s18  ;;  %p152_p4 = scmp.eq.s32.totalorder %s623_s23, 3 }
   0x8   : > { %s990_s27 = scalar_select %p133_p1, %s913_s20, %s135_s25  }
   0x9   : > { %p992_p5 = por %p146_p2, %p145_p0  ;;  %p996_p6 = por %p152_p4, %p151_p3 }
   0xa   : > { %p626_p7 = scmp.ge.s32.totalorder %s917_s21, 1  ;;  %p191_p8 = scmp.lt.s32.totalorder %s917_s21, 5 }
   0xc   : > { %p192_p9 = pnand %p626_p7, %p191_p8 }
   0xd   : > { %v241_v0 = vld [vmem:[%s1129_s1] sm:$0xff] (!%p192_p9)  ;;  %v242_v1 = vld [vmem:[%s1129_s1 + $0x8] sm:$0xff] (!%p192_p9)  ;;  %v243_v2 = vld [vmem:[%s1129_s1 + $0x10] sm:$0xff] (!%p192_p9)  ;;  %s628_s11 = sshll.u32 (!%p192_p9), %s975_s22, 4  ;;  %vm256_vm0 = vcmask (!%p192_p9), 523264   ;;  %v919_v28 = vmov (!%p192_p9), 0.0|0.0  }
   0xe   : > { %195 = sbr.rel (%p192_p9) target bundleno = 570 (0x23a), region = 40  ;;  %v767_v3 = vpack.c.bf16 (!%p192_p9), %v242_v1, %v241_v0  ;;  %v244_v4 = vld [vmem:[%s1129_s1 + $0x18] sm:$0xff] (!%p192_p9)  ;;  %p220_p10 = scmp.lt.s32.totalorder (!%p192_p9), %s628_s11, 63  ;;  %v245_v6 = vld [vmem:[%s1129_s1 + $0x20] sm:$0xff] (!%p192_p9)  ;;  %v246_v7 = vld [vmem:[%s1129_s1 + $0x28] sm:$0xff] (!%p192_p9)  ;;  %783 = vmatprep.subr.bf16.mxu1 (!%p192_p9), %v919_v28  ;;  %vm920_vm1 = vmmov (!%p192_p9), 0  }
   0xf   : > { %v771_v5 = vpack.c.bf16 (!%p192_p9), %v244_v4, %v243_v2  ;;  %v775_v8 = vpack.c.bf16 (!%p192_p9), %v246_v7, %v245_v6  ;;  %v247_v9 = vld [vmem:[%s1129_s1 + $0x30] sm:$0xff] (!%p192_p9)  ;;  %v248_v10 = vld [vmem:[%s1129_s1 + $0x38] sm:$0xff] (!%p192_p9)  ;;  %v921_v29 = vmov (!%p192_p9), 0.0   ;;  %v467_v30 = vld [vmem:[%s1132_s4] sm:$0xff] (!%p192_p9)  ;;  %v922_v31 = vmov (!%p192_p9), 0   ;;  %s216_s16 = sand.u32 (!%p192_p9), 1, %s909_s19  }
  0x10   : > { %768 = vmatprep.subr.bf16.mxu0 (!%p192_p9), %v767_v3  ;;  %v779_v12 = vpack.c.bf16 (!%p192_p9), %v248_v10, %v247_v9  ;;  %764 = vmatprep.mubr.msk.f32.mxu1 (!%p192_p9), %vm920_vm1, %v921_v29  ;;  %v630_v32 = vld [vmem:[%s1130_s2] ss:$0 sm:$0xff] (!%p192_p9)  ;;  %s627_s17 = sshll.u32 (!%p192_p9), %s216_s16, 3  ;;  %s551_s8 = scalar_lea.sflag (!%p192_p9), [#allocation3], %s216_s16 }
  0x11   : > { %770 = vmatpush3.bf16.msra.mxu0 (!%p192_p9), %v767_v3  ;;  %850 = vset.pattern.permute.xlu0 (!%p192_p9), %v922_v31  ;;  %s218_s25 = scalar_lea.vmem (!%p192_p9), [#allocation2], %s627_s17 }
  0x12   : > { %772 = vmatprep.subr.bf16.mxu0 (!%p192_p9), %v771_v5  ;;  %470 = vperm.xlu0 (!%p192_p9), %850, %v467_v30   ;;  %s564_s26 = sshll.u32 (!%p192_p9), %s218_s25, 4  ;;  %s1088_s26 = int_to_ptr.vmem [resolvable:$true] %s564_s26 }
  0x15   : > { %s1141_s11 = smov (!%p220_p10, %s628_s11), 63  ;;  %774 = vmatpush3.bf16.msra.mxu0 %v771_v5 }
  0x16   : > { %s629_s23 = sshll.u32 %s1141_s11, 3  ;;  %776 = vmatprep.subr.bf16.mxu0 %v775_v8 }
  0x17   : > { %s1030_s9 = scalar_lea.vmem %s1128_s0, %s629_s23  ;;  %s648_s23 = sshll.u32 %s975_s22, 7 }
  0x18   : > { %v225_v11 = vld [vmem:[%s1030_s9] sm:$0xff]  ;;  %v226_v13 = vld [vmem:[%s1030_s9 + $0x8] sm:$0xff]  ;;  %v227_v14 = vld [vmem:[%s1030_s9 + $0x10] sm:$0xff]  ;;  %s1086_s7 = scalar_lea.hbm %s1133_s5, %s648_s23  ;;  %s923_s22 = smov [#allocation2]  }
  0x19   : > { %708 = vmatprep.mubr.msk.f32.mxu0 %vm256_vm0, %v225_v11  ;;  %778 = vmatpush3.bf16.msra.mxu0 %v775_v8  ;;  %v228_v15 = vld [vmem:[%s1030_s9 + $0x18] sm:$0xff]  ;;  %v229_v16 = vld [vmem:[%s1030_s9 + $0x20] sm:$0xff]  ;;  %v230_v17 = vld [vmem:[%s1030_s9 + $0x28] sm:$0xff]  ;;  %s859_s10 = sshll.u32 %s923_s22, 4  ;;  %s860_s10 = int_to_ptr.vmem [resolvable:$false] %s859_s10 }
  0x1a   : > { %780 = vmatprep.subr.bf16.mxu0 %v779_v12  ;;  %v231_v18 = vld [vmem:[%s1030_s9 + $0x30] sm:$0xff]  ;;  %v232_v19 = vld [vmem:[%s1030_s9 + $0x38] sm:$0xff]  ;;  %v233_v20 = vld [vmem:[%s1030_s9 + $0x40] sm:$0xff]  ;;  %s861_s11 = scalar_lea.vmem %s860_s10, 256  ;;  %p862_p0 = scmp.lt.s32.totalorder %s1088_s26, %s860_s10 }
  0x1b   : > { %v234_v21 = vld [vmem:[%s1030_s9 + $0x48] sm:$0xff]  ;;  %v235_v22 = vld [vmem:[%s1030_s9 + $0x50] sm:$0xff]  ;;  %v236_v23 = vld [vmem:[%s1030_s9 + $0x58] sm:$0xff] }
  0x1c   : > { %v237_v24 = vld [vmem:[%s1030_s9 + $0x60] sm:$0xff]  ;;  %v238_v25 = vld [vmem:[%s1030_s9 + $0x68] sm:$0xff]  ;;  %v239_v26 = vld [vmem:[%s1030_s9 + $0x70] sm:$0xff] }
  0x1d   : > { %782 = vmatpush3.bf16.msra.mxu0 %v779_v12  ;;  %v240_v27 = vld [vmem:[%s1030_s9 + $0x78] sm:$0xff]  ;;  %s855_s9 = scalar_lea.vmem %s1088_s26, 128 }
  0x1e   : > { %p856_p11 = scmp.ne.s32.totalorder %s1088_s26, %s855_s9  ;;  %p863_p1 = scmp.lt.s32.totalorder %s861_s11, %s855_s9 }
  0x20   : > { %709 = vmatmul.mubr.msk.f32.vlgmr.msra.gmra.mrb[0].mxu0 %vm256_vm0, %v226_v13  ;;  %p857_p12 = pnand %p856_p11, %p992_p5  ;;  %p864_p2 = por %p863_p1, %p862_p0 }
  0x21   : > { %711 = vmatprep.mubr.msk.f32.mxu0 %vm256_vm0, %v227_v14 }
  0x22   : > { %p858_p13 = pneg %p857_p12 }
  0x24   : > { %712 = vmatmul.mubr.msk.f32.gmra.mrb[2].mxu0 %vm256_vm0, %v228_v15  ;;  %p865_p3 = pnand %p864_p2, %p858_p13 }
  0x25   : > { %714 = vmatprep.mubr.msk.f32.mxu0 %vm256_vm0, %v229_v16 }
  0x28   : > { %715 = vmatmul.mubr.msk.f32.gmra.mrb[4].mxu0 %vm256_vm0, %v230_v17 }
  0x29   : > { %717 = vmatprep.mubr.msk.f32.mxu0 %vm256_vm0, %v231_v18 }
  0x2c   : > { %718 = vmatmul.mubr.msk.f32.gmra.mrb[6].mxu0 %vm256_vm0, %v232_v19 }
  0x2d   : > { %720 = vmatprep.mubr.msk.f32.mxu0 %vm256_vm0, %v233_v20 }
  0x30   : > { %721 = vmatmul.mubr.msk.f32.gmra.mrb[8].mxu0 %vm256_vm0, %v234_v21 }
  0x31   : > { %723 = vmatprep.mubr.msk.f32.mxu0 %vm256_vm0, %v235_v22 }
  0x34   : > { %724 = vmatmul.mubr.msk.f32.gmra.mrb[10].mxu0 %vm256_vm0, %v236_v23 }
  0x35   : > { %726 = vmatprep.mubr.msk.f32.mxu0 %vm256_vm0, %v237_v24 }
  0x38   : > { %727 = vmatmul.mubr.msk.f32.gmra.mrb[12].mxu0 %vm256_vm0, %v238_v25  ;;  %v466_v25 = vld [vmem:[%s1131_s3] sm:$0xff] }
  0x39   : > { %729 = vmatprep.mubr.msk.f32.mxu0 %vm256_vm0, %v239_v26 }
  0x3c   : > { %730 = vmatmul.mubr.msk.f32.gmra.mrb[14].mxu0 %vm256_vm0, %v240_v27 }
  0x91   : > { %v471_v26 = vpop.permute.xlu0 %470 }
  0xf3   : > { %v710_v33 = vpop.f32.mrb[0].mxu0 }
  0xf4   : > { %v377_v34 = vadd.f32 %v710_v33, %v630_v32  ;;  %v371_v35 = vpop.f32.mrb[1].mxu0 }
  0xf5   : > { %v372_v36 = vadd.f32 %v630_v32, %v371_v35 }
  0xf6   : > { %v451_v37 = vmax.f32 %v377_v34, 0.0 }
  0xf7   : > { %v450_v38 = vmax.f32 %v372_v36, 0.0  ;;  %v713_v39 = vpop.f32.mrb[2].mxu0 }
  0xf8   : > { %v387_v40 = vadd.f32 %v713_v39, %v630_v32  ;;  %v381_v41 = vpop.f32.mrb[3].mxu0 }
  0xf9   : > { %v382_v42 = vadd.f32 %v630_v32, %v381_v41  ;;  %v784_v43 = vpack.c.bf16 %v451_v37, %v450_v38 }
  0xfa   : > { %v453_v44 = vmax.f32 %v387_v40, 0.0 }
  0xfb   : > { %v452_v45 = vmax.f32 %v382_v42, 0.0  ;;  %785 = vmatpush3.bf16.xpose.msra.mxu1 %v784_v43  ;;  %v716_v46 = vpop.f32.mrb[4].mxu0 }
  0xfc   : > { %v397_v47 = vadd.f32 %v716_v46, %v630_v32  ;;  %786 = vmatprep.subr.bf16.mxu1 %v919_v28  ;;  %v391_v48 = vpop.f32.mrb[5].mxu0 }
  0xfd   : > { %v787_v49 = vpack.c.bf16 %v453_v44, %v452_v45  ;;  %v392_v50 = vadd.f32 %v630_v32, %v391_v48 }
  0xfe   : > { %v455_v51 = vmax.f32 %v397_v47, 0.0 }
  0xff   : > { %v454_v52 = vmax.f32 %v392_v50, 0.0  ;;  %v719_v53 = vpop.f32.mrb[6].mxu0 }
 0x100   : > { %v407_v54 = vadd.f32 %v719_v53, %v630_v32  ;;  %v401_v55 = vpop.f32.mrb[7].mxu0 }
 0x101   : > { %v790_v56 = vpack.c.bf16 %v455_v51, %v454_v52  ;;  %v402_v57 = vadd.f32 %v630_v32, %v401_v55 }
 0x102   : > { %v457_v58 = vmax.f32 %v407_v54, 0.0 }
 0x103   : > { %788 = vmatpush3.bf16.xpose.msra.mxu1 %v787_v49  ;;  %v456_v59 = vmax.f32 %v402_v57, 0.0  ;;  %v722_v60 = vpop.f32.mrb[8].mxu0 }
 0x104   : > { %789 = vmatprep.subr.bf16.mxu1 %v919_v28  ;;  %v417_v61 = vadd.f32 %v722_v60, %v630_v32  ;;  %v411_v62 = vpop.f32.mrb[9].mxu0 }
 0x105   : > { %v793_v63 = vpack.c.bf16 %v457_v58, %v456_v59  ;;  %v412_v0 = vadd.f32 %v630_v32, %v411_v62 }
 0x106   : > { %v459_v1 = vmax.f32 %v417_v61, 0.0 }
 0x107   : > { %v458_v2 = vmax.f32 %v412_v0, 0.0  ;;  %v725_v3 = vpop.f32.mrb[10].mxu0 }
 0x108   : > { %v427_v4 = vadd.f32 %v725_v3, %v630_v32  ;;  %v421_v5 = vpop.f32.mrb[11].mxu0 }
 0x109   : > { %v796_v6 = vpack.c.bf16 %v459_v1, %v458_v2  ;;  %v422_v7 = vadd.f32 %v630_v32, %v421_v5 }
 0x10a   : > { %v461_v8 = vmax.f32 %v427_v4, 0.0 }
 0x10b   : > { %791 = vmatpush3.bf16.xpose.msra.mxu1 %v790_v56  ;;  %v460_v9 = vmax.f32 %v422_v7, 0.0  ;;  %v728_v10 = vpop.f32.mrb[12].mxu0 }
 0x10c   : > { %792 = vmatprep.subr.bf16.mxu1 %v919_v28  ;;  %v437_v11 = vadd.f32 %v728_v10, %v630_v32  ;;  %v431_v12 = vpop.f32.mrb[13].mxu0 }
 0x10d   : > { %v799_v13 = vpack.c.bf16 %v461_v8, %v460_v9  ;;  %v432_v14 = vadd.f32 %v630_v32, %v431_v12 }
 0x10e   : > { %v463_v15 = vmax.f32 %v437_v11, 0.0 }
 0x10f   : > { %v462_v16 = vmax.f32 %v432_v14, 0.0  ;;  %v731_v17 = vpop.f32.mrb[14].mxu0 }
 0x110   : > { %v447_v18 = vadd.f32 %v731_v17, %v630_v32  ;;  %v441_v19 = vpop.f32.mrb[15].mxu0 }
 0x111   : > { %v802_v20 = vpack.c.bf16 %v463_v15, %v462_v16  ;;  %v442_v21 = vadd.f32 %v630_v32, %v441_v19 }
 0x112   : > { %v465_v22 = vmax.f32 %v447_v18, 0.0 }
 0x113   : > { %794 = vmatpush3.bf16.xpose.msra.mxu1 %v793_v63  ;;  %v464_v23 = vmax.f32 %v442_v21, 0.0 }
 0x114   : > { %795 = vmatprep.subr.bf16.mxu1 %v919_v28 }
 0x115   : > { %v805_v24 = vpack.c.bf16 %v465_v22, %v464_v23 }
 0x11b   : > { %797 = vmatpush3.bf16.xpose.msra.mxu1 %v796_v6 }
 0x11c   : > { %798 = vmatprep.subr.bf16.mxu1 %v919_v28 }
 0x123   : > { %800 = vmatpush3.bf16.xpose.msra.mxu1 %v799_v13 }
 0x124   : > { %801 = vmatprep.subr.bf16.mxu1 %v919_v28 }
 0x12b   : > { %803 = vmatpush3.bf16.xpose.msra.mxu1 %v802_v20 }
 0x12c   : > { %804 = vmatprep.subr.bf16.mxu1 %v919_v28 }
 0x133   : > { %806 = vmatpush3.bf16.xpose.msra.mxu1 %v805_v24 }
 0x13a   : > { %765 = vmatmul.mubr.f32.vlgmr.msra.gmra.mrb[0].mxu1 %v466_v25 }
 0x20d   : > { %v539_v27 = vpop.f32.mrb[0].mxu1 }
 0x20e   : > { %v540_v29 = vadd.f32 %v539_v27, %v471_v26  ;;  %v766_v30 = vpop.f32.mrb[1].mxu1 }
 0x210   : > { %v543_v31 = vsub.f32 0.0, %v540_v29 }
 0x212   : > { %v544_v32 = vmul.f32 1.442695, %v543_v31 }
 0x214   : > { %851 = vpow2.f32 %v544_v32 }
 0x21e   : > { %v852_v33 = vpop.eup %851 }
 0x21f   : > { %v546_v34 = vadd.f32 1.0, %v852_v33 }
 0x221   : > { %853 = vrcp.f32 %v546_v34 }
 0x22b   : > { %v854_v28 = vpop.eup %853 }
 0x22c   : > { %549 = vst [vmem:[%s218_s25] sm:$0xff] %v854_v28 }
 0x22d   : > { %868 = shalt.err (!%p865_p3)
}
 0x22e   : > { %s869_s12 = scalar_lea.hbm %s1086_s7, 128  ;;  %s873_s15 = scalar_lea.hbm %s1133_s5, 512 }
 0x22f   : > { %p870_p4 = scmp.ne.s32.totalorder %s1086_s7, %s869_s12  ;;  %p874_p9 = scmp.lt.u32.totalorder %s1086_s7, %s1133_s5 }
 0x230   : > { %p875_p10 = scmp.lt.u32.totalorder %s873_s15, %s869_s12  ;;  %p877_p12 = scmp.lt.u32.totalorder %s869_s12, %s1086_s7 }
 0x231   : > { %p871_p7 = pnand %p870_p4, %p992_p5 }
 0x232   : > { %p876_p11 = por %p875_p10, %p874_p9 }
 0x233   : > { %p872_p8 = pneg %p871_p7 }
 0x234   : > { %p878_p13 = por %p877_p12, %p876_p11 }
 0x236   : > { %p879_p0 = pnand %p878_p13, %p872_p8 }
 0x238   : > { %882 = shalt.err (!%p879_p0)
}
 0x239   : > { %807 = dma.vmem_to_hbm [thread:$0]  (%p992_p5), %s1088_s26, 128, %s1086_s7, %s551_s8  }
 0x23a PF: > { %p813_p1 = scmp.ge.s32.totalorder %s917_s21, 2  ;;  %s576_s23 = sand.u32 1, %s905_s18  }
 0x23b   : > { %s577_s25 = scalar_lea.sflag [#allocation3], %s576_s23 }
 0x23c   : > { %p810_p2 = pnand %p813_p1, %p996_p6 }
 0x23e   : > { %900 = dma.done.wait (!%p810_p2), %s577_s25, 128  }
 0x23f   : > { %902 = vsyncadd (!%p810_p2), %s577_s25, 4294967168  ;;  %p15_p3 = scmp.ge.s32.totalorder %s979_s24, 6   ;;  %s1136_s18 = smov %s909_s19 }
 0x240   : > { %s1137_s19 = smov %s913_s20  ;;  %s1138_s20 = smov %s990_s27 }
 0x241   : > { %s1139_s21 = smov %s979_s24  ;;  %17 = sbr.rel (!%p15_p3) target bundleno = 3 (0x3), region = 75 }
 0x248   :  { %582 = vsyncpa [#allocation3], 1 }
 0x249   :  { %584 = vsyncpa [#allocation3 + $0x1], 1 }

</bundles_post_ra>
